<compile_context>
chip_gen: v7x
topology: tpu7x:2x2x1
jax: 0.10.0
libtpu: 0.0.40
codegen_flags: <defaults>
</compile_context>

<pallas_src>
import functools

import numpy as np
import jax
import jax.numpy as jnp
from jax import lax
from jax.experimental import pallas as pl
from jax.experimental.pallas import tpu as pltpu


# ----------------------------------------------------------------------------
# Host-side (numpy) precompute, mirroring Resizer.__init__.
# ----------------------------------------------------------------------------
def box(x):
    return ((-0.5 <= x) & (x < 0.5)) * 1.0


def cubic(x):
    absx = np.abs(x)
    absx2 = absx ** 2
    absx3 = absx ** 3
    return ((1.5 * absx3 - 2.5 * absx2 + 1) * (absx <= 1)
            + (-0.5 * absx3 + 2.5 * absx2 - 4 * absx + 2)
            * ((1 < absx) & (absx <= 2)))


def linear(x):
    return (x + 1) * ((-1 <= x) & (x < 0)) + (1 - x) * ((0 <= x) & (x <= 1))


def lanczos2(x):
    pi = np.pi
    eps = np.finfo(np.float32).eps
    return ((np.sin(pi * x) * np.sin(pi * x / 2) + eps)
            / (pi ** 2 * x ** 2 / 2 + eps) * (np.abs(x) < 2))


def lanczos3(x):
    pi = np.pi
    eps = np.finfo(np.float32).eps
    return ((np.sin(pi * x) * np.sin(pi * x / 3) + eps)
            / (pi ** 2 * x ** 2 / 3 + eps) * (np.abs(x) < 3))


def fix_scale_and_size(input_shape, output_shape, scale_factor):
    if scale_factor is not None:
        if np.isscalar(scale_factor) and len(input_shape) > 1:
            scale_factor = [scale_factor, scale_factor]
        scale_factor = list(scale_factor)
        scale_factor = [1] * (len(input_shape) - len(scale_factor)) + scale_factor
    if output_shape is not None:
        output_shape = list(input_shape[len(output_shape):]) + list(
            np.uint(np.array(output_shape)))
    if scale_factor is None:
        scale_factor = 1.0 * np.array(output_shape) / np.array(input_shape)
    if output_shape is None:
        output_shape = np.uint(np.ceil(np.array(input_shape) * np.array(scale_factor)))
    return scale_factor, output_shape


def contributions(in_length, out_length, scale, kernel, kernel_width, antialiasing):
    fixed_kernel = (lambda arg: scale * kernel(scale * arg)) if antialiasing else kernel
    kernel_width *= 1.0 / scale if antialiasing else 1.0
    out_coordinates = np.arange(1, out_length + 1)
    shifted_out_coordinates = out_coordinates - (out_length - in_length * scale) / 2
    match_coordinates = shifted_out_coordinates / scale + 0.5 * (1 - 1 / scale)
    left_boundary = np.floor(match_coordinates - kernel_width / 2)
    expanded_kernel_width = np.ceil(kernel_width) + 2
    # int64 (not int16) so large in_length cannot overflow; keep 2D (no squeeze)
    # so degenerate out_length==1 cases do not collapse dimensions.
    field_of_view = (np.expand_dims(left_boundary, axis=1)
                     + np.arange(expanded_kernel_width) - 1).astype(np.int64)
    weights = fixed_kernel(1.0 * np.expand_dims(match_coordinates, axis=1)
                           - field_of_view - 1)
    sum_weights = np.sum(weights, axis=1)
    sum_weights[sum_weights == 0] = 1.0
    weights = 1.0 * weights / np.expand_dims(sum_weights, axis=1)
    mirror = np.uint(np.concatenate((np.arange(in_length),
                                     np.arange(in_length - 1, -1, step=-1))))
    field_of_view = mirror[np.mod(field_of_view, mirror.shape[0])].astype(np.int64)
    nz_cols = np.nonzero(np.any(weights, axis=0))[0]
    weights = weights[:, nz_cols]
    field_of_view = field_of_view[:, nz_cols]
    return weights, field_of_view


def build_resizer_params(in_shape, scale_factor=None, output_shape=None,
                         kernel=None, antialiasing=True):
    """Deterministic parameter construction, equivalent to Resizer.__init__."""
    scale_factor, output_shape = fix_scale_and_size(in_shape, output_shape, scale_factor)
    method, kernel_width = {'cubic': (cubic, 4.0), 'lanczos2': (lanczos2, 4.0),
                            'lanczos3': (lanczos3, 6.0), 'box': (box, 1.0),
                            'linear': (linear, 2.0),
                            None: (cubic, 4.0)}.get(kernel)
    antialiasing = bool(antialiasing * np.any(np.array(scale_factor) < 1))
    sorted_dims = [int(d) for d in np.argsort(np.array(scale_factor))
                   if scale_factor[d] != 1]

    fov_list, w_list, mat_list = [], [], []
    for dim in sorted_dims:
        weights, fov = contributions(in_shape[dim], int(output_shape[dim]),
                                     scale_factor[dim], method, kernel_width,
                                     antialiasing)
        weights = np.asarray(weights, np.float32)      # (out_len, K)
        fov = np.asarray(fov, np.int64)                # (out_len, K)
        out_len = weights.shape[0]
        in_len = in_shape[dim]
        # Dense resize matrix R[j, i] = sum_k weights[j, k] * [fov[j, k] == i]
        # (scatter-add handles mirrored duplicate indices).
        R = np.zeros((out_len, in_len), np.float32)
        np.add.at(R, (np.repeat(np.arange(out_len), fov.shape[1]),
                      fov.reshape(-1)),
                  weights.reshape(-1))
        fov_list.append(fov)
        w_list.append(weights)
        mat_list.append(R)
    return sorted_dims, fov_list, w_list, mat_list


# ----------------------------------------------------------------------------
# Small helpers
# ----------------------------------------------------------------------------
def _cdiv(a, b):
    return -(-a // b)


def _round_up(n, m):
    return ((n + m - 1) // m) * m


@functools.lru_cache(maxsize=1)
def _vmem_capacity_bytes():
    try:
        return int(pltpu.get_tpu_info().vmem_capacity_bytes)
    except Exception:
        return 64 * 1024 * 1024        # conservative (v7x per-TensorCore)


def _vmem_limit(needed, cap):
    # Above what the kernel actually needs, below ~75% of physical.
    return int(min(cap * 3 // 4, max(2 * needed, 48 * 1024 * 1024)))


# ----------------------------------------------------------------------------
# Row-tiled GEMM kernel:  out (M, N) = x (M, K) @ mat (K, N),  f32 MXU accum.
# Used both by the Kronecker small-image path and the single-axis fallback.
# ----------------------------------------------------------------------------
def _rows_matmul_kernel(x_ref, mat_ref, o_ref, *, compute_dtype):
    x = x_ref[...].astype(compute_dtype)        # cast AFTER the VMEM load (no HBM pre-cast)
    o_ref[...] = jnp.dot(x, mat_ref[...],
                         preferred_element_type=jnp.float32).astype(o_ref.dtype)


def pallas_matmul_rows(x2d, mat, out_dtype, *, compute_dtype):
    M, K = x2d.shape
    _, N = mat.shape
    xb = x2d.dtype.itemsize
    cb = np.dtype(compute_dtype).itemsize
    ob = np.dtype(out_dtype).itemsize

    cap = _vmem_capacity_bytes()
    budget = int(cap * 0.45)
    mat_bytes = 2 * K * N * mat.dtype.itemsize            # constant, double-buffered
    per_row = 2 * (K * xb + N * ob) + K * cb + N * 4
    budget_rows = max(8, (budget - mat_bytes) // max(1, per_row))
    # TODO(synk): tile the K contraction with a VMEM accumulator when `mat`
    # alone exceeds the budget (very large resize matrices, esp. on v7x).
    if M <= 8:
        tm = M                                             # full-dim block is legal
    else:
        tm = min(budget_rows, M)
        if M >= 32:                                        # keep >=4 grid steps
            tm = min(tm, _round_up(_cdiv(M, 4), 8))
        tm = max(8, (tm // 8) * 8)                         # sublane-aligned block rows
    grid = (_cdiv(M, tm),)                                 # partial last block is fine

    needed = tm * per_row + mat_bytes
    kernel = functools.partial(_rows_matmul_kernel, compute_dtype=compute_dtype)
    return pl.pallas_call(
        kernel,
        out_shape=jax.ShapeDtypeStruct((M, N), out_dtype),
        grid=grid,
        in_specs=[pl.BlockSpec((tm, K), lambda i: (i, 0)),
                  pl.BlockSpec((K, N), lambda i: (0, 0))],
        out_specs=pl.BlockSpec((tm, N), lambda i: (i, 0)),
        compiler_params=pltpu.CompilerParams(
            dimension_semantics=("parallel",),             # shards rows across TCs
            vmem_limit_bytes=_vmem_limit(needed, cap)),
        cost_estimate=pl.CostEstimate(
            flops=int(2 * M * K * N), transcendentals=0,
            bytes_accessed=int(M * (K * xb + N * ob) + K * N * mat.dtype.itemsize)),
    )(x2d, mat)


# ----------------------------------------------------------------------------
# General fused H+W resize kernel:  Y[b] = R_H @ X[b] @ R_W^T  per (n,c) slab.
# (a) one big W-resize matmul over all slabs in the block (MXU M dim = tb*Hin),
# (b) H-resize per slab from a VMEM-scratch f32 intermediate, writing straight
#     to the output ref.  No transposes, intermediate never touches HBM.
# ----------------------------------------------------------------------------
def _fused_hw_kernel(x_ref, rh_ref, rwt_ref, o_ref, t_ref, *, compute_dtype):
    tb, hin, _ = x_ref.shape
    # (a) single W-resize matmul for every slab in the block.
    x = x_ref[...].astype(compute_dtype).reshape(tb * hin, x_ref.shape[2])
    t_ref[...] = jnp.dot(x, rwt_ref[...], preferred_element_type=jnp.float32)
    rh = rh_ref[...]                                    # kept f32 for accuracy

    # (b) H-resize per slab; reads the f32 intermediate from VMEM scratch.
    def h_stage(b, carry):
        row = pl.multiple_of(b * hin, hin)
        t_b = t_ref[pl.ds(row, hin), :]
        o_ref[b] = jnp.dot(rh, t_b,
                           preferred_element_type=jnp.float32).astype(o_ref.dtype)
        return carry

    lax.fori_loop(0, tb, h_stage, 0, unroll=min(tb, 8))


def pallas_resize_hw(x3, rh_np, rw_np, *, compute_dtype, out_dtype):
    NC, hin, win = x3.shape
    hout = rh_np.shape[0]
    wout = rw_np.shape[0]
    xb = x3.dtype.itemsize
    cb = np.dtype(compute_dtype).itemsize
    ob = np.dtype(out_dtype).itemsize

    cap = _vmem_capacity_bytes()
    budget = int(cap * 0.45)
    # R_H stays f32 (second-matmul accuracy); R_W^T may be cast to bf16.
    rh = jnp.asarray(rh_np, jnp.float32)
    rwt = jnp.asarray(np.ascontiguousarray(rw_np.T), compute_dtype)
    # Constants are double-buffered by BlockSpec: count them twice (conservative).
    const_bytes = 2 * (hout * hin * 4 + win * wout * cb)
    per_slab = (2 * hin * win * xb            # double-buffered input slab
                + 2 * hout * wout * ob        # double-buffered output slab
                + hin * win * cb              # in-kernel cast copy
                + hin * wout * 4)             # f32 W-resize scratch intermediate
    budget_slabs = max(1, (budget - const_bytes) // max(1, per_slab))
    tb = max(1, min(budget_slabs, NC))
    if NC >= 4:
        tb = min(tb, _cdiv(NC, 4))            # keep >=4 grid steps (pipelining, 2 TCs)
    grid = (_cdiv(NC, tb),)                   # partial last block handled by Pallas

    needed = tb * per_slab + const_bytes
    flops = 2 * NC * (hin * win * wout + hout * hin * wout)
    bytes_accessed = (NC * (hin * win * xb + hout * wout * ob)
                      + hout * hin * 4 + win * wout * cb)

    kernel = functools.partial(_fused_hw_kernel, compute_dtype=compute_dtype)
    return pl.pallas_call(
        kernel,
        out_shape=jax.ShapeDtypeStruct((NC, hout, wout), out_dtype),
        grid=grid,
        in_specs=[pl.BlockSpec((tb, hin, win), lambda i: (i, 0, 0)),
                  pl.BlockSpec((hout, hin), lambda i: (0, 0)),
                  pl.BlockSpec((win, wout), lambda i: (0, 0))],
        out_specs=pl.BlockSpec((tb, hout, wout), lambda i: (i, 0, 0)),
        scratch_shapes=[pltpu.VMEM((tb * hin, wout), jnp.float32)],
        compiler_params=pltpu.CompilerParams(
            dimension_semantics=("parallel",),            # shards slabs across TCs
            vmem_limit_bytes=_vmem_limit(needed, cap)),
        cost_estimate=pl.CostEstimate(flops=int(flops), transcendentals=0,
                                      bytes_accessed=int(bytes_accessed)),
    )(x3, rh, rwt)


# ----------------------------------------------------------------------------
# Dispatch wrappers
# ----------------------------------------------------------------------------
def resize_hw_kron(x, R_h, R_w, *, compute_dtype):
    """Small-image path: one GEMM with the Kronecker matrix kron(R_H, R_W)^T."""
    *lead, hin, win = x.shape
    hout, wout = R_h.shape[0], R_w.shape[0]
    NC = int(np.prod(lead)) if lead else 1
    K = np.kron(np.asarray(R_h, np.float32), np.asarray(R_w, np.float32)).T
    x2 = x.reshape(NC, hin * win)                        # lane-dense (Hin*Win) rows
    out2 = pallas_matmul_rows(x2, jnp.asarray(K, compute_dtype), x.dtype,
                              compute_dtype=compute_dtype)
    return out2.reshape(tuple(lead) + (hout, wout))


def resize_hw_fused(x, R_h, R_w, *, compute_dtype):
    """General path: fused Y[b] = R_H @ X[b] @ R_W^T per (n,c) slab."""
    *lead, hin, win = x.shape
    hout, wout = R_h.shape[0], R_w.shape[0]
    NC = int(np.prod(lead)) if lead else 1
    x3 = x.reshape(NC, hin, win)
    out3 = pallas_resize_hw(x3, np.asarray(R_h, np.float32),
                            np.asarray(R_w, np.float32),
                            compute_dtype=compute_dtype, out_dtype=x.dtype)
    return out3.reshape(tuple(lead) + (hout, wout))


def resize_along_dim(x, dim, R, *, compute_dtype):
    """Fallback: apply dense resize matrix R (out_len, in_len) along axis `dim`."""
    # TODO(synk): non-trailing dims still round-trip through an XLA transpose.
    ndim = x.ndim
    out_len, in_len = R.shape
    perm = list(range(ndim))
    perm[dim], perm[-1] = perm[-1], perm[dim]
    xt = jnp.transpose(x, perm) if dim != ndim - 1 else x
    lead = xt.shape[:-1]
    x2d = xt.reshape(-1, in_len)
    rt = jnp.asarray(np.ascontiguousarray(np.asarray(R, np.float32).T), compute_dtype)
    out2d = pallas_matmul_rows(x2d, rt, x.dtype, compute_dtype=compute_dtype)
    out = out2d.reshape(lead + (out_len,))
    if dim != ndim - 1:
        out = jnp.transpose(out, perm)                   # swap is its own inverse
    return out


def resizer_forward(x, sorted_dims, matrices, *, compute_dtype=jnp.float32,
                    force_path=None):
    """Matches Resizer.forward semantics."""
    ndim = x.ndim
    dims = list(sorted_dims)
    if ndim >= 2 and set(dims) == {ndim - 2, ndim - 1}:
        R_h = matrices[dims.index(ndim - 2)]
        R_w = matrices[dims.index(ndim - 1)]
        hin, win = int(x.shape[-2]), int(x.shape[-1])
        hout, wout = R_h.shape[0], R_w.shape[0]
        kron_bytes = hin * win * hout * wout * 4
        sep_flops = hin * win * wout + hout * hin * wout
        kron_flops = hin * win * hout * wout
        path = force_path
        if path is None:
            small = kron_bytes <= (2 << 20) and kron_flops <= 16 * sep_flops
            path = "kron" if small else "fused"
        if path == "kron":
            return resize_hw_kron(x, R_h, R_w, compute_dtype=compute_dtype)
        return resize_hw_fused(x, R_h, R_w, compute_dtype=compute_dtype)
    out = x
    for dim, R in zip(dims, matrices):
        out = resize_along_dim(out, dim, R, compute_dtype=compute_dtype)
    return out


# ----------------------------------------------------------------------------
# Pure-numpy reference mirroring Resizer.forward (gather + weighted sum).
# ----------------------------------------------------------------------------
def reference_forward(x_np, sorted_dims, fov_list, w_list):
    x = np.asarray(x_np, np.float32)
    n_extra = x.ndim - 1
    for dim, fov, w in zip(sorted_dims, fov_list, w_list):
        fov_t = fov.T                                    # (K, out_len)
        w_t = w.T.reshape(w.T.shape + (1,) * n_extra)    # (K, out_len, 1, ..., 1)
        x = np.swapaxes(x, dim, 0)
        x = np.sum(x[fov_t] * w_t, axis=0)
        x = np.swapaxes(x, dim, 0)
    return x


# ----------------------------------------------------------------------------
if __name__ == "__main__":
    # NCHW input, downscale H and W by 0.5 with the default cubic kernel +
    # antialiasing (the module's default configuration).
    N, C, H, W = 2, 4, 16, 16
    in_shape = (N, C, H, W)

    key = jax.random.PRNGKey(0)
    x = jax.random.normal(key, in_shape, dtype=jnp.float32)

    sorted_dims, fov_list, w_list, mat_list = build_resizer_params(
        in_shape, scale_factor=0.5, kernel=None, antialiasing=True)

    ref = reference_forward(np.asarray(x), sorted_dims, fov_list, w_list)

    # 1) Default path for small images: single Kronecker GEMM, f32 compute.
    fwd = jax.jit(lambda t: resizer_forward(t, sorted_dims, mat_list))
    out = jax.block_until_ready(fwd(x))
    assert out.shape == ref.shape, (out.shape, ref.shape)
    np.testing.assert_allclose(np.asarray(out), ref, rtol=1e-3, atol=1e-3)

    # 2) General fused H+W path (the one used for larger images), f32 compute.
    fwd_fused = jax.jit(lambda t: resizer_forward(t, sorted_dims, mat_list,
                                                  force_path="fused"))
    out_fused = jax.block_until_ready(fwd_fused(x))
    assert out_fused.shape == ref.shape, (out_fused.shape, ref.shape)
    np.testing.assert_allclose(np.asarray(out_fused), ref, rtol=1e-3, atol=1e-3)

    # 3) bf16 compute path: x is cast in-kernel after the VMEM load (no HBM
    #    pre-cast copy); the second contraction / R_H stay f32.
    fwd_bf16 = jax.jit(lambda t: resizer_forward(t, sorted_dims, mat_list,
                                                 compute_dtype=jnp.bfloat16))
    out_bf = jax.block_until_ready(fwd_bf16(x))
    assert out_bf.shape == ref.shape, (out_bf.shape, ref.shape)
    np.testing.assert_allclose(np.asarray(out_bf), ref, rtol=3e-2, atol=3e-2)

    print("KERNEL_OK")
</pallas_src>

<mosaic_0001>
module attributes {stable_mosaic.version = 11 : i64} {
  func.func @_rows_matmul_kernel(%arg0: i32, %arg1: memref<8x256xf32, #tpu.memory_space<vmem>>, %arg2: memref<256x64xf32, #tpu.memory_space<vmem>>, %arg3: memref<8x64xf32, #tpu.memory_space<vmem>>) attributes {dimension_semantics = [#tpu.dimension_semantics<parallel>], iteration_bounds = array<i64: 1>, scalar_prefetch = 0 : i64, scratch_operands = 0 : i64, tpu.core_type = #tpu.core_type<tc>, window_params = [{transform_indices = @transform_0, window_bounds = array<i64: 8, 256>}, {pipeline_mode = #tpu.pipeline_mode<synchronous>, transform_indices = @transform_1, window_bounds = array<i64: 256, 64>}, {transform_indices = @transform_2, window_bounds = array<i64: 8, 64>}]} {
    %c0 = arith.constant 0 : index
    %c0_0 = arith.constant 0 : index
    %0 = vector.load %arg1[%c0, %c0_0] : memref<8x256xf32, #tpu.memory_space<vmem>>, vector<8x256xf32>
    %c0_1 = arith.constant 0 : index
    %c0_2 = arith.constant 0 : index
    %1 = vector.load %arg2[%c0_1, %c0_2] : memref<256x64xf32, #tpu.memory_space<vmem>>, vector<256x64xf32>
    %cst = arith.constant dense<0.000000e+00> : vector<8x64xf32>
    %2 = tpu.matmul %0, %1, %cst {dimension_numbers = #tpu.dot_dimension_numbers<[1], [0], [0], [1], [0, 0, 1, 1], [], []>} : vector<8x256xf32>, vector<256x64xf32>, vector<8x64xf32> -> vector<8x64xf32>
    %c0_3 = arith.constant 0 : index
    %c0_4 = arith.constant 0 : index
    %3 = vector.load %arg3[%c0_3, %c0_4] : memref<8x64xf32, #tpu.memory_space<vmem>>, vector<8x64xf32>
    tpu.vector_store %arg3[%c0_3, %c0_4], %2 {strides = array<i32>} : memref<8x64xf32, #tpu.memory_space<vmem>>, vector<8x64xf32>,
    return
  }
  func.func @transform_0(%arg0: i32) -> (i32, i32) {
    %c0_i32 = arith.constant 0 : i32
    %c0_i32_0 = arith.constant 0 : i32
    return %arg0, %c0_i32 : i32, i32
  }
  func.func @transform_1(%arg0: i32) -> (i32, i32) {
    %c0_i32 = arith.constant 0 : i32
    %c0_i32_0 = arith.constant 0 : i32
    %c0_i32_1 = arith.constant 0 : i32
    return %c0_i32, %c0_i32_0 : i32, i32
  }
  func.func @transform_2(%arg0: i32) -> (i32, i32) {
    %c0_i32 = arith.constant 0 : i32
    %c0_i32_0 = arith.constant 0 : i32
    return %arg0, %c0_i32 : i32, i32
  }
}

</mosaic_0001>

<bundles_post_ra>
// kernel: _lambda_.1
= control target key start
LH: loop header
LB: loop body
LE: loop exit
PB: predicated region body
PF: predicated region fallthrough
CT: control target
= control target key end

     0   :  { %7 = vsyncpa [#allocation3], 0  ;;  %s230_s9 = smov [#allocation2]   ;;  %s269_s0 = inlined_call_operand.vmem [shape: f32[8,256], index: 0, kind: input, shape index: {}]   ;;  %s270_s1 = inlined_call_operand.hbm [shape: f32[256,64], index: 1, kind: input, shape index: {}]   ;;  %s271_s2 = inlined_call_operand.vmem [shape: f32[8,64], index: 2, kind: output, shape index: {}]  }
   0x1   :  { %s15_s10 = sshll.u32 %s230_s9, 4  ;;  %s206_s13 = scalar_lea.hbm %s270_s1, 4096  ;;  %s16_s10 = int_to_ptr.vmem [resolvable:$true] %s15_s10 }
   0x2   :  { %p207_p0 = scmp.ne.s32.totalorder %s270_s1, %s206_s13  ;;  %p210_p1 = scmp.lt.u32.totalorder %s206_s13, %s270_s1 }
   0x4   :  { %p212_p2 = pnand %p210_p1, %p207_p0 }
   0x6   :  { %215 = shalt.err (!%p212_p2)
}
   0x7   :  { %s216_s18 = scalar_lea.vmem %s16_s10, 4096  ;;  %p221_p4 = scmp.lt.s32.totalorder %s16_s10, %s16_s10 }
   0x8   :  { %p217_p3 = scmp.ne.s32.totalorder %s16_s10, %s216_s18  ;;  %p222_p5 = scmp.lt.s32.totalorder %s216_s18, %s216_s18 }
   0xa   :  { %p223_p6 = por %p222_p5, %p221_p4 }
   0xc   :  { %p224_p7 = pnand %p223_p6, %p217_p3 }
   0xe   :  { %227 = shalt.err (!%p224_p7)
}
   0xf   :  { %s231_s19 = smov 128   ;;  %s232_s20 = smov 8  }
  0x10   :  { %21 = dma.hbm_to_vmem [thread:$0]  %s270_s1, 4096, %s16_s10, [#allocation3], %s231_s19, %s231_s19, %s232_s20  }
  0x11   :  { %228 = dma.done.wait [#allocation3], 4096  }
  0x12   :  { %229 = vsyncadd [#allocation3], 4294963200  ;;  %v43_v0 = vld [vmem:[#allocation2 + $0x80] sm:$0xff]  ;;  %v44_v1 = vld [vmem:[#allocation2 + $0x88] sm:$0xff]  ;;  %vm129_vm0 = vcmask 523264  }
  0x13   :  { %v27_v2 = vld [vmem:[#allocation2] sm:$0xff]  ;;  %v171_v3 = vpack.c.bf16 %v44_v1, %v43_v0  ;;  %v28_v4 = vld [vmem:[#allocation2 + $0x8] sm:$0xff]  ;;  %v45_v5 = vld [vmem:[#allocation2 + $0x90] sm:$0xff] }
  0x14   :  { %v46_v6 = vld [vmem:[#allocation2 + $0x98] sm:$0xff]  ;;  %v173_v7 = vpack.c.bf16 %v28_v4, %v27_v2  ;;  %v29_v9 = vld [vmem:[#allocation2 + $0x10] sm:$0xff]  ;;  %v47_v11 = vld [vmem:[#allocation2 + $0xa0] sm:$0xff] }
  0x15   :  { %v175_v8 = vpack.c.bf16 %v46_v6, %v45_v5  ;;  %v30_v10 = vld [vmem:[#allocation2 + $0x18] sm:$0xff]  ;;  %172 = vmatprep.subr.bf16.mxu0 %v171_v3  ;;  %v48_v12 = vld [vmem:[#allocation2 + $0xa8] sm:$0xff]  ;;  %v31_v15 = vld [vmem:[#allocation2 + $0x20] sm:$0xff] }
  0x16   :  { %174 = vmatpush3.bf16.msra.mxu0 %v173_v7  ;;  %v177_v13 = vpack.c.bf16 %v30_v10, %v29_v9  ;;  %v179_v14 = vpack.c.bf16 %v48_v12, %v47_v11  ;;  %v32_v16 = vld [vmem:[#allocation2 + $0x28] sm:$0xff]  ;;  %v49_v17 = vld [vmem:[#allocation2 + $0xb0] sm:$0xff]  ;;  %v50_v18 = vld [vmem:[#allocation2 + $0xb8] sm:$0xff] }
  0x17   :  { %176 = vmatprep.subr.bf16.mxu0 %v175_v8  ;;  %v181_v19 = vpack.c.bf16 %v32_v16, %v31_v15  ;;  %v183_v20 = vpack.c.bf16 %v50_v18, %v49_v17  ;;  %v33_v21 = vld [vmem:[#allocation2 + $0x30] sm:$0xff]  ;;  %v34_v22 = vld [vmem:[#allocation2 + $0x38] sm:$0xff]  ;;  %v51_v23 = vld [vmem:[#allocation2 + $0xc0] sm:$0xff] }
  0x18   :  { %v52_v24 = vld [vmem:[#allocation2 + $0xc8] sm:$0xff]  ;;  %v185_v26 = vpack.c.bf16 %v34_v22, %v33_v21  ;;  %v35_v28 = vld [vmem:[#allocation2 + $0x40] sm:$0xff]  ;;  %v53_v30 = vld [vmem:[#allocation2 + $0xd0] sm:$0xff] }
  0x19   :  { %v26_v25 = vld [vmem:[%s269_s0 + $0x8] sm:$0xff]  ;;  %v187_v27 = vpack.c.bf16 %v52_v24, %v51_v23  ;;  %v54_v31 = vld [vmem:[#allocation2 + $0xd8] sm:$0xff]  ;;  %v37_v34 = vld [vmem:[#allocation2 + $0x50] sm:$0xff] }
  0x1a   :  { %178 = vmatpush3.bf16.msra.mxu0 %v177_v13  ;;  %123 = vmatprep.mubr.f32.mxu0 %v26_v25  ;;  %v36_v29 = vld [vmem:[#allocation2 + $0x48] sm:$0xff]  ;;  %v191_v33 = vpack.c.bf16 %v54_v31, %v53_v30  ;;  %v38_v35 = vld [vmem:[#allocation2 + $0x58] sm:$0xff]  ;;  %v55_v36 = vld [vmem:[#allocation2 + $0xe0] sm:$0xff] }
  0x1b   :  { %180 = vmatprep.subr.bf16.mxu0 %v179_v14  ;;  %v189_v32 = vpack.c.bf16 %v36_v29, %v35_v28  ;;  %v56_v37 = vld [vmem:[#allocation2 + $0xe8] sm:$0xff]  ;;  %v193_v38 = vpack.c.bf16 %v38_v35, %v37_v34  ;;  %v39_v40 = vld [vmem:[#allocation2 + $0x60] sm:$0xff]  ;;  %v57_v42 = vld [vmem:[#allocation2 + $0xf0] sm:$0xff] }
  0x1c   :  { %v195_v39 = vpack.c.bf16 %v56_v37, %v55_v36  ;;  %v40_v41 = vld [vmem:[#allocation2 + $0x68] sm:$0xff]  ;;  %v58_v43 = vld [vmem:[#allocation2 + $0xf8] sm:$0xff]  ;;  %v41_v46 = vld [vmem:[#allocation2 + $0x70] sm:$0xff] }
  0x1d   :  { %v197_v44 = vpack.c.bf16 %v40_v41, %v39_v40  ;;  %v199_v45 = vpack.c.bf16 %v58_v43, %v57_v42  ;;  %v42_v47 = vld [vmem:[#allocation2 + $0x78] sm:$0xff]  ;;  %v25_v49 = vld [vmem:[%s269_s0] sm:$0xff] }
  0x1e   :  { %182 = vmatpush3.bf16.msra.mxu0 %v181_v19  ;;  %v201_v48 = vpack.c.bf16 %v42_v47, %v41_v46 }
  0x1f   :  { %184 = vmatprep.subr.bf16.mxu0 %v183_v20 }
  0x22   :  { %186 = vmatpush3.bf16.msra.mxu0 %v185_v26 }
  0x23   :  { %188 = vmatprep.subr.bf16.mxu0 %v187_v27 }
  0x26   :  { %190 = vmatpush3.bf16.msra.mxu0 %v189_v32 }
  0x27   :  { %192 = vmatprep.subr.bf16.mxu0 %v191_v33 }
  0x2a   :  { %194 = vmatpush3.bf16.msra.mxu0 %v193_v38 }
  0x2b   :  { %196 = vmatprep.subr.bf16.mxu0 %v195_v39 }
  0x2e   :  { %198 = vmatpush3.bf16.msra.mxu0 %v197_v44 }
  0x2f   :  { %200 = vmatprep.subr.bf16.mxu0 %v199_v45 }
  0x32   :  { %202 = vmatpush3.bf16.msra.mxu0 %v201_v48 }
  0x35   :  { %124 = vmatmul.mubr.f32.vlgmr.msra.gmra.mrb[0].mxu0 %v25_v49 }
 0x108   :  { %v168_v50 = vpop.f32.mrb[0].mxu0 }
 0x109   :  { %v169_v51 = vpop.f32.mrb[1].mxu0 }
 0x10a   :  { %v170_v52 = vadd.f32 %v169_v51, %v168_v50 }
 0x10c   :  { %130 = vst.msk [vmem:[%s271_s2] sm:$0xff] %vm129_vm0, %v170_v52 }
 0x10d   :  { %135 = vsyncpa [#allocation3], 1 }

</bundles_post_ra>
